<compile_context>
chip_gen: v6e
topology: v6e:2x2x1
jax: 0.10.0
libtpu: 0.0.40
codegen_flags: <defaults>
</compile_context>

<pallas_src>
import functools

import jax
import jax.numpy as jnp
from jax.experimental import pallas as pl
from jax.experimental.pallas import tpu as pltpu


def _cdiv(a, b):
    return -(-a // b)


def _round_up(x, m):
    return _cdiv(x, m) * m


def _choose_tiling(batch, tb_max):
    """Pick (tile_rows, padded_batch).

    * tiny batches: one grid step (per-step overhead dominates; splitting only
      adds ~0.35us launches).
    * otherwise: an even number of steps >= 2 so both TensorCores on v7x get
      balanced work; tiles rounded to 128 rows so every BlockSpec -- including
      the lane-dense (1, tile) output block -- stays (8, 128)-aligned.
    """
    b8 = _round_up(batch, 8)
    if b8 < 256:
        return b8, b8
    tb_max = max(128, tb_max)
    n_steps = max(2, 2 * _cdiv(_cdiv(b8, 2), tb_max))
    tile = _round_up(_cdiv(b8, n_steps), 128)
    return tile, tile * n_steps


def _qcritic_kernel(obs_ref, act_ref, w1_ref, b1_ref, w2_ref, b2_ref,
                    wo_ref, bo_ref, out_ref, x_scr):
    """One batch tile of the fused 2-hidden-layer MLP (all operands in VMEM)."""
    d_obs = obs_ref.shape[-1]
    # torch.cat((obs, act), dim=1), fused: write both tiles side-by-side into a
    # VMEM scratch so layer 1 is ONE MXU matmul instead of two half-K matmuls.
    x_scr[:, :d_obs] = obs_ref[...]
    x_scr[:, d_obs:] = act_ref[...]
    x = x_scr[...].astype(w1_ref.dtype)          # no-op in f32 mode; bf16 cast otherwise

    h1 = jnp.dot(x, w1_ref[...], preferred_element_type=jnp.float32) + b1_ref[...]
    h1 = jnp.maximum(h1, 0.0)
    h2 = jnp.dot(h1.astype(w2_ref.dtype), w2_ref[...],
                 preferred_element_type=jnp.float32) + b2_ref[...]
    h2 = jnp.maximum(h2, 0.0)

    # Output layer has a single unit: contract Wo (1, H2) against h2 (tb, H2)
    # over the feature dim (same q@k^T-style contraction flash attention uses),
    # so the batch dim lands on lanes and the tile result is a lane-dense
    # (1, tb) row -> unmasked vector stores instead of a masked (tb, 1) column.
    q = jax.lax.dot_general(
        wo_ref[...], h2.astype(wo_ref.dtype),
        dimension_numbers=(((1,), (1,)), ((), ())),
        preferred_element_type=jnp.float32)
    out_ref[...] = q + bo_ref[...]


def torch_to_kernel_params(params, *, use_bf16=False):
    """One-time conversion from PyTorch Linear layout ((out,in) weights, (out,)
    biases) into kernel layout.  Call once, outside the training loop.

    use_bf16=True stores the matmul weights in bfloat16 (MXU-native on
    v6e/v7x, ~3x fewer vmatmul passes than f32); accumulation stays float32
    in-kernel.  Default is float32 to stay closest to the f64 torch reference.
    """
    w1, b1, w2, b2, wo, bo = params
    mm_dtype = jnp.bfloat16 if use_bf16 else jnp.float32
    return (jnp.asarray(w1.T, mm_dtype),                    # (Din, H1)  rows = [obs ; act]
            jnp.asarray(b1, jnp.float32).reshape(1, -1),    # (1, H1)
            jnp.asarray(w2.T, mm_dtype),                    # (H1, H2)
            jnp.asarray(b2, jnp.float32).reshape(1, -1),    # (1, H2)
            jnp.asarray(wo, mm_dtype).reshape(1, -1),       # (1, H2) output row
            jnp.asarray(bo, jnp.float32).reshape(1, 1))     # (1, 1)


@functools.partial(jax.jit, static_argnames=("tb",))
def qcritic_forward(obs, action, kparams, *, tb=2048):
    """obs: (B, dim_obs), action: (B, dim_action)  ->  (B, 1) Q-values."""
    w1, b1, w2, b2, wo, bo = kparams
    # TODO(synk): obs/action could also be streamed from HBM as bf16 when bf16
    # weights are used (halves input DMA); kept f32 here for accuracy.
    obs = obs.astype(jnp.float32)
    action = action.astype(jnp.float32)

    B, d_obs = obs.shape
    d_act = action.shape[1]
    d_in = d_obs + d_act
    h1_dim = b1.shape[1]
    h2_dim = b2.shape[1]
    assert w1.shape == (d_in, h1_dim)

    tile, b_pad = _choose_tiling(B, tb)
    if b_pad != B:
        # Padded rows yield nonzero (bias-driven) Q-values; they are sliced off
        # below.  Any future fused loss must keep this mask/slice.
        obs = jnp.pad(obs, ((0, b_pad - B), (0, 0)))
        action = jnp.pad(action, ((0, b_pad - B), (0, 0)))
    grid = (b_pad // tile,)

    # Weights/biases: constant block index -> fetched once, VMEM-resident
    # across the whole batch sweep.  obs/act/out stream tile-by-tile.
    def resident(arr):
        return pl.BlockSpec(arr.shape, lambda i: (0, 0))

    flops = 2 * b_pad * (d_in * h1_dim + h1_dim * h2_dim + h2_dim)
    bytes_accessed = 4 * (b_pad * (d_in + 1)
                          + d_in * h1_dim + h1_dim
                          + h1_dim * h2_dim + h2_dim + h2_dim + 1)

    out = pl.pallas_call(
        _qcritic_kernel,
        out_shape=jax.ShapeDtypeStruct((1, b_pad), jnp.float32),
        grid=grid,
        in_specs=[
            pl.BlockSpec((tile, d_obs), lambda i: (i, 0)),   # obs tile (streamed)
            pl.BlockSpec((tile, d_act), lambda i: (i, 0)),   # action tile (streamed)
            resident(w1), resident(b1), resident(w2), resident(b2),
            resident(wo), resident(bo),
        ],
        out_specs=pl.BlockSpec((1, tile), lambda i: (0, i)),  # lane-dense output row
        scratch_shapes=[pltpu.VMEM((tile, d_in), jnp.float32)],
        compiler_params=pltpu.CompilerParams(
            dimension_semantics=("parallel",),       # 2-TC sharding on v7x
            vmem_limit_bytes=32 * 1024 * 1024),      # way above need on every gen
        cost_estimate=pl.CostEstimate(flops=flops, transcendentals=0,
                                      bytes_accessed=bytes_accessed),
    )(obs, action, w1, b1, w2, b2, wo, bo)
    return out[0, :B].reshape(B, 1)


def _xavier_uniform(key, shape):
    # PyTorch Linear weight layout: (fan_out, fan_in)
    fan_out, fan_in = shape
    bound = (6.0 / (fan_in + fan_out)) ** 0.5
    return jax.random.uniform(key, shape, jnp.float32, -bound, bound)


def init_qcritic_params(key, dim_obs, dim_action, dims_hidden=(64, 64)):
    """Matches QCriticNet.__init__: xavier_uniform weights, zero biases.
    Returned in PyTorch layout (w: (out,in), b: (out,))."""
    n_neurons = (dim_obs + dim_action,) + tuple(dims_hidden) + (1,)
    keys = jax.random.split(key, len(n_neurons) - 1)
    params = []
    for i, (d_in, d_out) in enumerate(zip(n_neurons[:-1], n_neurons[1:])):
        w = _xavier_uniform(keys[i], (d_out, d_in))
        b = jnp.zeros((d_out,), jnp.float32)
        params.extend([w, b])
    return tuple(params)  # (w1, b1, w2, b2, wo, bo)


def reference_forward(obs, action, params):
    """Pure-JAX reference (PyTorch semantics, float32)."""
    w1, b1, w2, b2, wo, bo = params
    x = jnp.concatenate([obs, action], axis=1)
    x = jnp.maximum(x @ w1.T + b1, 0.0)
    x = jnp.maximum(x @ w2.T + b2, 0.0)
    return x @ wo.T + bo


if __name__ == "__main__":
    key = jax.random.PRNGKey(0)
    k_obs, k_act, k_par = jax.random.split(key, 3)

    dim_obs, dim_action = 16, 8
    dims_hidden = (64, 64)   # module default

    torch_params = init_qcritic_params(k_par, dim_obs, dim_action, dims_hidden)
    kparams = torch_to_kernel_params(torch_params)   # one-time layout prep (f32 mode)

    # batch=2 exercises the tiny single-step grid; batch=300 exercises the
    # padded, 2-step ("parallel" / megacore) grid with the lane-dense output.
    for batch in (2, 300):
        obs = jax.random.normal(k_obs, (batch, dim_obs), jnp.float32)
        action = jax.random.normal(k_act, (batch, dim_action), jnp.float32)

        q = jax.block_until_ready(qcritic_forward(obs, action, kparams))
        q_ref = reference_forward(obs, action, torch_params)

        assert q.shape == (batch, 1)
        assert jnp.allclose(q, q_ref, atol=1e-5, rtol=1e-5), \
            float(jnp.max(jnp.abs(q - q_ref)))

    print("KERNEL_OK")
</pallas_src>

<mosaic_0001>
module attributes {stable_mosaic.version = 11 : i64} {
  func.func @_qcritic_kernel(%arg0: i32, %arg1: memref<8x16xf32, #tpu.memory_space<vmem>>, %arg2: memref<8x8xf32, #tpu.memory_space<vmem>>, %arg3: memref<24x64xf32, #tpu.memory_space<vmem>>, %arg4: memref<1x64xf32, #tpu.memory_space<vmem>>, %arg5: memref<64x64xf32, #tpu.memory_space<vmem>>, %arg6: memref<1x64xf32, #tpu.memory_space<vmem>>, %arg7: memref<1x64xf32, #tpu.memory_space<vmem>>, %arg8: memref<1x1xf32, #tpu.memory_space<vmem>>, %arg9: memref<1x8xf32, #tpu.memory_space<vmem>>, %arg10: memref<8x24xf32, #tpu.memory_space<vmem>>) attributes {dimension_semantics = [#tpu.dimension_semantics<parallel>], iteration_bounds = array<i64: 1>, scalar_prefetch = 0 : i64, scratch_operands = 1 : i64, tpu.core_type = #tpu.core_type<tc>, window_params = [{transform_indices = @transform_0, window_bounds = array<i64: 8, 16>}, {transform_indices = @transform_1, window_bounds = array<i64: 8, 8>}, {pipeline_mode = #tpu.pipeline_mode<synchronous>, transform_indices = @transform_2, window_bounds = array<i64: 24, 64>}, {pipeline_mode = #tpu.pipeline_mode<synchronous>, transform_indices = @transform_3, window_bounds = array<i64: 1, 64>}, {pipeline_mode = #tpu.pipeline_mode<synchronous>, transform_indices = @transform_4, window_bounds = array<i64: 64, 64>}, {pipeline_mode = #tpu.pipeline_mode<synchronous>, transform_indices = @transform_5, window_bounds = array<i64: 1, 64>}, {pipeline_mode = #tpu.pipeline_mode<synchronous>, transform_indices = @transform_6, window_bounds = array<i64: 1, 64>}, {pipeline_mode = #tpu.pipeline_mode<synchronous>, transform_indices = @transform_7, window_bounds = array<i64: 1, 1>}, {transform_indices = @transform_8, window_bounds = array<i64: 1, 8>}]} {
    %c0 = arith.constant 0 : index
    %c0_0 = arith.constant 0 : index
    %0 = vector.load %arg1[%c0, %c0_0] : memref<8x16xf32, #tpu.memory_space<vmem>>, vector<8x16xf32>
    %c0_1 = arith.constant 0 : index
    %c0_2 = arith.constant 0 : index
    %1 = vector.load %arg10[%c0_1, %c0_2] : memref<8x24xf32, #tpu.memory_space<vmem>>, vector<8x16xf32>
    tpu.vector_store %arg10[%c0_1, %c0_2], %0 {strides = array<i32>} : memref<8x24xf32, #tpu.memory_space<vmem>>, vector<8x16xf32>,
    %c0_3 = arith.constant 0 : index
    %c0_4 = arith.constant 0 : index
    %2 = vector.load %arg2[%c0_3, %c0_4] : memref<8x8xf32, #tpu.memory_space<vmem>>, vector<8x8xf32>
    %c0_5 = arith.constant 0 : index
    %c16 = arith.constant 16 : index
    %3 = vector.load %arg10[%c0_5, %c16] : memref<8x24xf32, #tpu.memory_space<vmem>>, vector<8x8xf32>
    tpu.vector_store %arg10[%c0_5, %c16], %2 {strides = array<i32>} : memref<8x24xf32, #tpu.memory_space<vmem>>, vector<8x8xf32>,
    %c0_6 = arith.constant 0 : index
    %c0_7 = arith.constant 0 : index
    %4 = vector.load %arg10[%c0_6, %c0_7] : memref<8x24xf32, #tpu.memory_space<vmem>>, vector<8x24xf32>
    %c0_8 = arith.constant 0 : index
    %c0_9 = arith.constant 0 : index
    %5 = vector.load %arg3[%c0_8, %c0_9] : memref<24x64xf32, #tpu.memory_space<vmem>>, vector<24x64xf32>
    %cst = arith.constant dense<0.000000e+00> : vector<8x64xf32>
    %6 = tpu.matmul %4, %5, %cst {dimension_numbers = #tpu.dot_dimension_numbers<[1], [0], [0], [1], [0, 0, 1, 1], [], []>} : vector<8x24xf32>, vector<24x64xf32>, vector<8x64xf32> -> vector<8x64xf32>
    %c0_10 = arith.constant 0 : index
    %c0_11 = arith.constant 0 : index
    %7 = vector.load %arg4[%c0_10, %c0_11] : memref<1x64xf32, #tpu.memory_space<vmem>>, vector<1x64xf32>
    %8 = vector.broadcast %7 : vector<1x64xf32> to vector<8x64xf32>
    %9 = arith.addf %6, %8 : vector<8x64xf32>
    %cst_12 = arith.constant 0.000000e+00 : f32
    %10 = vector.broadcast %cst_12 : f32 to vector<8x64xf32>
    %11 = arith.maximumf %9, %10 : vector<8x64xf32>
    %c0_13 = arith.constant 0 : index
    %c0_14 = arith.constant 0 : index
    %12 = vector.load %arg5[%c0_13, %c0_14] : memref<64x64xf32, #tpu.memory_space<vmem>>, vector<64x64xf32>
    %cst_15 = arith.constant dense<0.000000e+00> : vector<8x64xf32>
    %13 = tpu.matmul %11, %12, %cst_15 {dimension_numbers = #tpu.dot_dimension_numbers<[1], [0], [0], [1], [0, 0, 1, 1], [], []>} : vector<8x64xf32>, vector<64x64xf32>, vector<8x64xf32> -> vector<8x64xf32>
    %c0_16 = arith.constant 0 : index
    %c0_17 = arith.constant 0 : index
    %14 = vector.load %arg6[%c0_16, %c0_17] : memref<1x64xf32, #tpu.memory_space<vmem>>, vector<1x64xf32>
    %15 = vector.broadcast %14 : vector<1x64xf32> to vector<8x64xf32>
    %16 = arith.addf %13, %15 : vector<8x64xf32>
    %cst_18 = arith.constant 0.000000e+00 : f32
    %17 = vector.broadcast %cst_18 : f32 to vector<8x64xf32>
    %18 = arith.maximumf %16, %17 : vector<8x64xf32>
    %c0_19 = arith.constant 0 : index
    %c0_20 = arith.constant 0 : index
    %19 = vector.load %arg7[%c0_19, %c0_20] : memref<1x64xf32, #tpu.memory_space<vmem>>, vector<1x64xf32>
    %cst_21 = arith.constant dense<0.000000e+00> : vector<1x8xf32>
    %20 = tpu.matmul %19, %18, %cst_21 {dimension_numbers = #tpu.dot_dimension_numbers<[1], [1], [0], [0], [0, 0, 1, 0], [], []>} : vector<1x64xf32>, vector<8x64xf32>, vector<1x8xf32> -> vector<1x8xf32>
    %c0_22 = arith.constant 0 : index
    %c0_23 = arith.constant 0 : index
    %21 = vector.load %arg8[%c0_22, %c0_23] : memref<1x1xf32, #tpu.memory_space<vmem>>, vector<1x1xf32>
    %22 = vector.broadcast %21 : vector<1x1xf32> to vector<1x8xf32>
    %23 = arith.addf %20, %22 : vector<1x8xf32>
    %c0_24 = arith.constant 0 : index
    %c0_25 = arith.constant 0 : index
    %24 = vector.load %arg9[%c0_24, %c0_25] : memref<1x8xf32, #tpu.memory_space<vmem>>, vector<1x8xf32>
    tpu.vector_store %arg9[%c0_24, %c0_25], %23 {strides = array<i32>} : memref<1x8xf32, #tpu.memory_space<vmem>>, vector<1x8xf32>,
    return
  }
  func.func @transform_0(%arg0: i32) -> (i32, i32) {
    %c0_i32 = arith.constant 0 : i32
    %c0_i32_0 = arith.constant 0 : i32
    return %arg0, %c0_i32 : i32, i32
  }
  func.func @transform_1(%arg0: i32) -> (i32, i32) {
    %c0_i32 = arith.constant 0 : i32
    %c0_i32_0 = arith.constant 0 : i32
    return %arg0, %c0_i32 : i32, i32
  }
  func.func @transform_2(%arg0: i32) -> (i32, i32) {
    %c0_i32 = arith.constant 0 : i32
    %c0_i32_0 = arith.constant 0 : i32
    %c0_i32_1 = arith.constant 0 : i32
    return %c0_i32, %c0_i32_0 : i32, i32
  }
  func.func @transform_3(%arg0: i32) -> (i32, i32) {
    %c0_i32 = arith.constant 0 : i32
    %c0_i32_0 = arith.constant 0 : i32
    %c0_i32_1 = arith.constant 0 : i32
    return %c0_i32, %c0_i32_0 : i32, i32
  }
  func.func @transform_4(%arg0: i32) -> (i32, i32) {
    %c0_i32 = arith.constant 0 : i32
    %c0_i32_0 = arith.constant 0 : i32
    %c0_i32_1 = arith.constant 0 : i32
    return %c0_i32, %c0_i32_0 : i32, i32
  }
  func.func @transform_5(%arg0: i32) -> (i32, i32) {
    %c0_i32 = arith.constant 0 : i32
    %c0_i32_0 = arith.constant 0 : i32
    %c0_i32_1 = arith.constant 0 : i32
    return %c0_i32, %c0_i32_0 : i32, i32
  }
  func.func @transform_6(%arg0: i32) -> (i32, i32) {
    %c0_i32 = arith.constant 0 : i32
    %c0_i32_0 = arith.constant 0 : i32
    %c0_i32_1 = arith.constant 0 : i32
    return %c0_i32, %c0_i32_0 : i32, i32
  }
  func.func @transform_7(%arg0: i32) -> (i32, i32) {
    %c0_i32 = arith.constant 0 : i32
    %c0_i32_0 = arith.constant 0 : i32
    %c0_i32_1 = arith.constant 0 : i32
    return %c0_i32, %c0_i32_0 : i32, i32
  }
  func.func @transform_8(%arg0: i32) -> (i32, i32) {
    %c0_i32 = arith.constant 0 : i32
    %c0_i32_0 = arith.constant 0 : i32
    return %c0_i32, %arg0 : i32, i32
  }
}

</mosaic_0001>

<bundles_post_ra>
// kernel: qcritic_forward.1
= control target key start
LH: loop header
LB: loop body
LE: loop exit
PB: predicated region body
PF: predicated region fallthrough
CT: control target
= control target key end

     0   :  { %s497_s0 = inlined_call_operand.vmem [shape: f32[8,16], index: 0, kind: input, shape index: {}]   ;;  %s498_s1 = inlined_call_operand.vmem [shape: f32[8,8], index: 1, kind: input, shape index: {}]   ;;  %s499_s2 = inlined_call_operand.vmem [shape: f32[24,64], index: 2, kind: input, shape index: {}]   ;;  %s500_s3 = inlined_call_operand.vmem [shape: f32[1,64], index: 3, kind: input, shape index: {}]   ;;  %s501_s4 = inlined_call_operand.hbm [shape: f32[64,64], index: 4, kind: input, shape index: {}]   ;;  %s502_s5 = inlined_call_operand.vmem [shape: f32[1,64], index: 5, kind: input, shape index: {}]   ;;  %s503_s6 = inlined_call_operand.vmem [shape: f32[1,64], index: 6, kind: input, shape index: {}]   ;;  %s504_s7 = inlined_call_operand.<no memory space> [shape: f32[1,1], index: 7, kind: input, shape index: {}]   ;;  %s505_s8 = inlined_call_operand.vmem [shape: f32[1,8], index: 8, kind: output, shape index: {}]  }
   0x1   :  { %v13_v0 = vstv %s504_s7 }
   0x2   :  { %14 = vst [vmem:[#allocation3] sm:$0x1] %v13_v0 }
   0x3   :  { %15 = vsyncpa [#allocation5], 0  ;;  %s409_s29 = smov [#allocation4]  }
   0x4   :  { %s29_s30 = sshll.u32 %s409_s29, 4  ;;  %s30_s30 = int_to_ptr.vmem [resolvable:$true] %s29_s30 }
   0x5   :  { %s395_s9 = scalar_lea.vmem %s30_s30, 1024  ;;  %p400_p1 = scmp.lt.s32.totalorder %s30_s30, %s30_s30 }
   0x6   :  { %p396_p0 = scmp.ne.s32.totalorder %s30_s30, %s395_s9  ;;  %p401_p2 = scmp.lt.s32.totalorder %s395_s9, %s395_s9 }
   0x8   :  { %p402_p3 = por %p401_p2, %p400_p1 }
   0xa   :  { %p403_p4 = pnand %p402_p3, %p396_p0 }
   0xc   :  { %406 = shalt.err (!%p403_p4)
}
   0xd   :  { %s410_s10 = smov 128   ;;  %s411_s11 = smov 8  }
   0xe   :  { %35 = dma.hbm_to_vmem [thread:$0]  %s501_s4, 1024, %s30_s30, [#allocation5], %s410_s10, %s410_s10, %s411_s11  }
   0xf   :  { %407 = dma.done.wait [#allocation5], 1024  }
  0x10   :  { %408 = vsyncadd [#allocation5], 4294966272  ;;  %v412_v1 = vmov 0.0   ;;  %vm413_vm0 = vmmov 0   ;;  %vm46_vm1 = vcmask 130048   ;;  %v48_v2 = vld [vmem:[%s498_s1] sm:$0xff]  ;;  %v238_v30 = vlaneseq }
  0x11   :  { %346 = vmatprep.subr.mxu0 %v412_v1  ;;  %355 = vmatprep.subr.mxu1 %v412_v1  ;;  %v45_v3 = vld [vmem:[%s497_s0] sm:$0xff]  ;;  %v58_v4 = vld [vmem:[%s499_s2 + $0x10] sm:$0xff]  ;;  %s414_s18 = smov 16   ;;  %v57_v5 = vld [vmem:[%s499_s2 + $0x8] sm:$0xff]  ;;  %vm53_vm2 = vcmask 195712   ;;  %vm66_vm3 = vcmask 195584  }
  0x12   :  { %352 = vmatprep.mubr.msk.f32.mxu0 %vm413_vm0, %v412_v1  ;;  %371 = vmatprep.mubr.msk.f32.mxu1 %vm413_vm0, %v412_v1  ;;  %47 = vst.msk [vmem:[#allocation2] sm:$0xff] %vm46_vm1, %v45_v3  ;;  %v148_v6 = vld [vmem:[#allocation4 + $0x38] sm:$0xff]  ;;  %v147_v8 = vld [vmem:[#allocation4 + $0x30] sm:$0xff]  ;;  %v146_v9 = vld [vmem:[#allocation4 + $0x28] sm:$0xff]  ;;  %vm156_vm4 = vcmask 523264   ;;  %v415_v23 = vmov 0  }
  0x13   :  { %50 = vrot.lane.b32.xlu0 %v48_v2, %s414_s18  ;;  %347 = vmatpush3.msra.mxu0 %v58_v4  ;;  %v56_v7 = vld [vmem:[%s499_s2] sm:$0xff]  ;;  %v145_v10 = vld [vmem:[#allocation4 + $0x20] sm:$0xff]  ;;  %v142_v15 = vld [vmem:[#allocation4 + $0x8] sm:$0xff]  ;;  %v239_v31 = vshrl.u32 %v238_v30, 7  ;;  %vm318_vm5 = vcmask 57344  }
  0x14   :  { %348 = vmatprep.subr.mxu0 %v412_v1  ;;  %356 = vmatpush3.msra.mxu1 %v148_v6  ;;  %v144_v11 = vld [vmem:[#allocation4 + $0x18] sm:$0xff]  ;;  %v143_v14 = vld [vmem:[#allocation4 + $0x10] sm:$0xff]  ;;  %v141_v16 = vld [vmem:[#allocation4] sm:$0xff] }
  0x15   :  { %349 = vmatpush3.msra.mxu0 %v57_v5  ;;  %357 = vmatprep.subr.mxu1 %v412_v1  ;;  %v325_v17 = vld [vmem:[%s500_s3] ss:$0 sm:$0xff]  ;;  %v232_v22 = vld [vmem:[#allocation3] sm:$0x1]  ;;  %v240_v32 = vsub.s32 0, %v239_v31 }
  0x16   :  { %350 = vmatprep.subr.mxu0 %v412_v1  ;;  %358 = vmatpush3.msra.mxu1 %v147_v8  ;;  %v327_v24 = vld [vmem:[%s502_s5] ss:$0 sm:$0xff] }
  0x17   :  { %351 = vmatpush3.msra.mxu0 %v56_v7  ;;  %359 = vmatprep.subr.mxu1 %v412_v1  ;;  %v231_v29 = vld [vmem:[%s503_s6] sm:$0x1] }
  0x18   :  { %360 = vmatpush3.msra.mxu1 %v146_v9  ;;  %374 = vmatprep.subr.mxu0 %v412_v1 }
  0x19   :  { %361 = vmatprep.subr.mxu1 %v412_v1  ;;  %386 = vset.pattern.permute.xlu0 %v415_v23 }
  0x1a   :  { %362 = vmatpush3.msra.mxu1 %v145_v10  ;;  %235 = vperm.xlu0 %386, %v232_v22  }
  0x1b   :  { %363 = vmatprep.subr.mxu1 %v412_v1 }
  0x1c   :  { %364 = vmatpush3.msra.mxu1 %v144_v11 }
  0x1d   :  { %365 = vmatprep.subr.mxu1 %v412_v1 }
  0x1e   :  { %366 = vmatpush3.msra.mxu1 %v143_v14 }
  0x1f   :  { %367 = vmatprep.subr.mxu1 %v412_v1 }
  0x20   :  { %368 = vmatpush3.msra.mxu1 %v142_v15 }
  0x21   :  { %369 = vmatprep.subr.mxu1 %v412_v1 }
  0x22   :  { %370 = vmatpush3.msra.mxu1 %v141_v16 }
  0x85   :  { %v51_v12 = vpop.permute.xlu0 %50 }
  0x86   :  { %54 = vst.msk [vmem:[#allocation2] sm:$0xff] %vm53_vm2, %v51_v12 }
  0x8d   :  { %v55_v13 = vld [vmem:[#allocation2] sm:$0xff] }
  0x8e   :  { %353 = vmatmul.mubr.msk.f32.vlgmr.msra.gmra.mxu0 %vm66_vm3, %v55_v13 }
  0x8f   :  { %376 = vmatprep.mubr.msk.f32.mxu0 %vm413_vm0, %v412_v1 }
  0x95   :  { %v236_v33 = vpop.permute.xlu0 %235 }
  0x96   :  { %v241_v34 = vrot.slane %v236_v33, %v240_v32 }
 0x14e   :  { %v136_v18 = vpop.f32.mrf.mxu0 }
 0x14f   :  { %v137_v19 = vadd.f32 %v325_v17, %v136_v18 }
 0x150   :  { %v354_v20 = vpop.f32.mrf.mxu0 }
 0x151   :  { %v140_v21 = vmax.f32 %v137_v19, 0.0 }
 0x153   :  { %372 = vmatmul.mubr.msk.f32.vlgmr.msra.gmra.mxu1 %vm156_vm4, %v140_v21 }
 0x213   :  { %v226_v25 = vpop.f32.mrf.mxu1 }
 0x214   :  { %v227_v26 = vadd.f32 %v327_v24, %v226_v25 }
 0x215   :  { %v373_v27 = vpop.f32.mrf.mxu1 }
 0x216   :  { %v230_v28 = vmax.f32 %v227_v26, 0.0 }
 0x218   :  { %375 = vmatpush3.xpose.msk.msra.mxu0 %vm156_vm4, %v230_v28 }
 0x21b   :  { %377 = vmatmul.mubr.msk.f32.vlgmr.msra.gmra.mxu0 %vm156_vm4, %v231_v29 }
 0x2db   :  { %v314_v35 = vpop.f32.mrf.mxu0 }
 0x2dc   :  { %v315_v36 = vadd.f32 %v314_v35, %v241_v34 }
 0x2dd   :  { %v378_v37 = vpop.f32.mrf.mxu0 }
 0x2de   :  { %319 = vst.msk [vmem:[%s505_s8] sm:$0x1] %vm318_vm5, %v315_v36 }
 0x2df   :  { %324 = vsyncpa [#allocation5], 1 }

</bundles_post_ra>
